<compile_context>
chip_gen: v5e
topology: v5e:2x2
jax: 0.10.0
libtpu: 0.0.40
codegen_flags: <defaults>
</compile_context>

<pallas_src>
import functools

import jax
import jax.numpy as jnp
from jax.experimental import pallas as pl
from jax.experimental.pallas import tpu as pltpu

CPAD = 128  # lane-dense output block; classes occupy lanes [0, C)


def _round_up(n, m):
    return ((n + m - 1) // m) * m


def _uniform_hash(gr, gc, seed32):
    """Stateless uniform in [0, 1) keyed on int32 (global row, class) coords.

    Pure int32 multiply / xor / shift (sign bit masked before every right shift
    so arithmetic shifts behave like logical ones) — lowers on TPU Mosaic and in
    the CPU interpreter, unlike pltpu.prng_* which broke the previous version.
    """
    h = gr * jnp.int32(0x61C88647) + gc * jnp.int32(0x27D4EB2F) + jnp.int32(seed32)
    h = h & 0x7FFFFFFF
    h = h ^ (h >> 15)
    h = h * jnp.int32(0x045D9F3B)
    h = h & 0x7FFFFFFF
    h = h ^ (h >> 13)
    h = h * jnp.int32(0x2C1B3C6D)
    bits = h & 0x00FFFFFF                                   # 24-bit, non-negative
    return bits.astype(jnp.float32) * jnp.float32(1.0 / (1 << 24))


def ensemble_vote_kernel(x_ref, w_ref, b_ref, o_ref, *,
                         num_experts, num_classes, seed32):
    """One grid step == one tile of B*T rows; all experts fused in one matmul."""
    tr = o_ref.shape[0]
    n_lanes = w_ref.shape[1]          # round_up(E*C, 128): densely packed classes

    # Fused expert logits: (TR, D)bf16 @ (D, N)bf16 -> f32 acc.  Single MXU matmul.
    logits_all = jnp.dot(x_ref[...], w_ref[...],
                         preferred_element_type=jnp.float32) + b_ref[...]

    lane_f = jax.lax.broadcasted_iota(jnp.int32, (tr, n_lanes), 1).astype(jnp.float32)
    cls_f = jax.lax.broadcasted_iota(jnp.int32, (tr, CPAD), 1).astype(jnp.float32)

    neg = jnp.float32(-1e30)
    counts = jnp.zeros((tr, CPAD), jnp.float32)
    for e in range(num_experts):                       # static unroll; E is small
        lo = float(e * num_classes)
        hi = float(e * num_classes + num_classes)
        in_blk = (lane_f >= lo) & (lane_f < hi)        # this expert's class lanes
        blk = jnp.where(in_blk, logits_all, neg)
        row_max = jnp.max(blk, axis=-1, keepdims=True)
        # First-occurrence tie-break: smallest lane index among the maxima.
        cand = jnp.where(blk == row_max, lane_f, jnp.float32(n_lanes))
        pred = jnp.min(cand, axis=-1, keepdims=True) - lo    # class id in [0, C)
        counts = counts + (cls_f == pred).astype(jnp.float32)

    # Vote increment 1 + rand()*0.001, applied once after integer-vote
    # accumulation (noise draw hoisted out of the per-expert loop).
    # TODO(synk): PyTorch draws an independent np.random.rand() per vote; here a
    # deterministic (row, class)-keyed uniform scales every vote of that cell.
    # It satisfies the same [0, 0.001]-per-vote bound but is not vote-independent.
    row0 = pl.program_id(0) * tr
    gr = jax.lax.broadcasted_iota(jnp.int32, (tr, CPAD), 0) + row0
    gc = jax.lax.broadcasted_iota(jnp.int32, (tr, CPAD), 1)
    u = _uniform_hash(gr, gc, seed32)
    o_ref[...] = counts * (jnp.float32(1.0) + u * jnp.float32(0.001))


def pack_experts(weights, biases, *, compute_dtype=jnp.bfloat16):
    """Pack (E, D, C) weights / (E, C) biases into the dense lane layout ONCE.

    Columns [e*C, (e+1)*C) of the (D, N) slab hold expert e's classes,
    N = round_up(E*C, 128).  Call at model init, not per forward pass.
    """
    E, D, C = weights.shape
    n = _round_up(E * C, CPAD)
    wp = weights.transpose(1, 0, 2).reshape(D, E * C)          # (D, E*C)
    wp = jnp.pad(wp, ((0, 0), (0, n - E * C))).astype(compute_dtype)
    bp = jnp.pad(biases.reshape(E * C), (0, n - E * C)).astype(jnp.float32)
    return wp, bp.reshape(1, n)


def ensembler_forward(x, packed_w, packed_b, *, num_experts, num_classes,
                      seed=0, max_tile_rows=1024):
    """x: (B, T, D); packed_w: (D, N) bf16; packed_b: (1, N) f32.

    Returns {'logits': (B, T, C) float32 vote counts}, each expert's vote
    incremented by 1 + rand()*0.001 (deterministic in-kernel hash uniform).
    """
    B, T, D = x.shape
    E, C = num_experts, num_classes
    N = packed_w.shape[1]
    assert C <= CPAD, "more classes than one 128-lane block"
    assert N == _round_up(E * C, CPAD), "packed weight lane count mismatch"
    BT = B * T

    # Row tile: multiple of 8 sublanes; always >=2 tiles so both v7x TensorCores
    # get work; capped so large inputs still amortize per-grid-step overhead.
    tr = min(_round_up(max_tile_rows, 8), max(8, _round_up(pl.cdiv(BT, 2), 8)))
    bt_pad = _round_up(BT, tr)

    x2d = x.reshape(BT, D).astype(packed_w.dtype)
    if bt_pad != BT:
        x2d = jnp.pad(x2d, ((0, bt_pad - BT), (0, 0)))

    grid = (bt_pad // tr,)

    # VMEM budget: pipelined x/out tiles + resident W/b slabs + in-kernel
    # intermediates (fused logits + ~8 (tr,128) f32 temporaries), 2x safety.
    itm = jnp.dtype(packed_w.dtype).itemsize
    need = (2 * tr * D * itm          # x tile (double-buffered)
            + 2 * D * N * itm         # packed W slab
            + 2 * N * 4               # packed bias
            + 2 * tr * CPAD * 4       # output tile (double-buffered)
            + tr * N * 4              # logits_all intermediate
            + 8 * tr * CPAD * 4)      # masks / cand / counts / noise temporaries
    # 48 MiB cap fits v7x's 64 MiB/TC with Mosaic-scratch headroom; v5e/v6e
    # (128 MiB physical) could go higher for very large D*N.
    vmem_limit = int(min(48 * 1024 * 1024, max(8 * 1024 * 1024, 2 * need)))
    # TODO(synk): for very large D*E (weight slab approaching the VMEM budget,
    # esp. on v7x) add an "arbitrary" K grid axis over D with a VMEM accumulator.

    seed32 = (int(seed) * 2654435761 + 0x9E3779B9) & 0x7FFFFFFF

    votes = pl.pallas_call(
        functools.partial(ensemble_vote_kernel,
                          num_experts=E, num_classes=C, seed32=seed32),
        out_shape=jax.ShapeDtypeStruct((bt_pad, CPAD), jnp.float32),
        grid_spec=pltpu.PrefetchScalarGridSpec(
            num_scalar_prefetch=0,
            grid=grid,
            in_specs=[
                pl.BlockSpec((tr, D), lambda i: (i, 0)),   # x row tile (streamed)
                pl.BlockSpec((D, N), lambda i: (0, 0)),    # packed W (resident)
                pl.BlockSpec((1, N), lambda i: (0, 0)),    # packed b (resident)
            ],
            out_specs=pl.BlockSpec((tr, CPAD), lambda i: (i, 0)),
        ),
        compiler_params=pltpu.CompilerParams(
            dimension_semantics=("parallel",),   # row tiles split across TCs
            vmem_limit_bytes=vmem_limit,
        ),
    )(x2d, packed_w, packed_b)

    # TODO(synk): consumers that can work on the lane-dense (bt_pad, 128) buffer
    # should take `votes` directly; this slice only restores the module's (B,T,C)
    # output contract.
    return {'logits': votes[:BT, :C].reshape(B, T, C)}


def reference_vote_counts(x, weights, biases, *, compute_dtype=jnp.bfloat16):
    """Pure-JAX integer vote counts (noise-free part), same bf16 operands."""
    B, T, D = x.shape
    E, _, C = weights.shape
    x2d = x.reshape(B * T, D).astype(compute_dtype)
    counts = jnp.zeros((B * T, C), jnp.float32)
    for e in range(E):
        logits = jnp.dot(x2d, weights[e].astype(compute_dtype),
                         preferred_element_type=jnp.float32)
        logits = logits + biases[e].astype(jnp.float32)[None, :]
        pred = jnp.argmax(logits, axis=-1)
        counts = counts + jax.nn.one_hot(pred, C, dtype=jnp.float32)
    return counts.reshape(B, T, C)


if __name__ == "__main__":
    # Small, deterministic shapes: batch=2, seq=8, features=32, classes=5, experts=3.
    B, T, D, C, E = 2, 8, 32, 5, 3

    key = jax.random.PRNGKey(0)
    kx, kw, kb = jax.random.split(key, 3)
    x = jax.random.normal(kx, (B, T, D), dtype=jnp.float32)
    weights = jax.random.normal(kw, (E, D, C), dtype=jnp.float32) * 0.1
    biases = jax.random.normal(kb, (E, C), dtype=jnp.float32) * 0.01

    packed_w, packed_b = pack_experts(weights, biases)   # done once, at "init"

    out = ensembler_forward(x, packed_w, packed_b,
                            num_experts=E, num_classes=C, seed=0)
    logits = out['logits']
    jax.block_until_ready(logits)

    assert logits.shape == (B, T, C)
    assert logits.dtype == jnp.float32

    # Integer vote counts must match a pure-JAX reference built from the SAME
    # bf16-quantized operands; fractional part is the bounded vote noise.
    counts_ref = reference_vote_counts(x, weights, biases)
    assert bool(jnp.array_equal(jnp.round(logits), counts_ref)), "vote counts mismatch"
    frac = logits - counts_ref
    assert bool(jnp.all(frac >= -1e-6)), "negative noise"
    assert bool(jnp.all(frac <= counts_ref * 1e-3 + 1e-6)), "noise out of range"
    total = float(jnp.sum(logits))
    assert E * B * T - 1e-4 <= total <= E * B * T * 1.001 + 1e-3

    print("KERNEL_OK")
</pallas_src>

<mosaic_0001>
module attributes {stable_mosaic.version = 11 : i64} {
  func.func @ensemble_vote_kernel(%arg0: i32, %arg1: memref<8x32xbf16, #tpu.memory_space<vmem>>, %arg2: memref<32x128xbf16, #tpu.memory_space<vmem>>, %arg3: memref<1x128xf32, #tpu.memory_space<vmem>>, %arg4: memref<8x128xf32, #tpu.memory_space<vmem>>) attributes {dimension_semantics = [#tpu.dimension_semantics<parallel>], iteration_bounds = array<i64: 2>, scalar_prefetch = 0 : i64, scratch_operands = 0 : i64, tpu.core_type = #tpu.core_type<tc>, window_params = [{transform_indices = @transform_0, window_bounds = array<i64: 8, 32>}, {pipeline_mode = #tpu.pipeline_mode<synchronous>, transform_indices = @transform_1, window_bounds = array<i64: 32, 128>}, {pipeline_mode = #tpu.pipeline_mode<synchronous>, transform_indices = @transform_2, window_bounds = array<i64: 1, 128>}, {transform_indices = @transform_3, window_bounds = array<i64: 8, 128>}]} {
    %c0 = arith.constant 0 : index
    %c0_0 = arith.constant 0 : index
    %0 = vector.load %arg1[%c0, %c0_0] : memref<8x32xbf16, #tpu.memory_space<vmem>>, vector<8x32xbf16>
    %c0_1 = arith.constant 0 : index
    %c0_2 = arith.constant 0 : index
    %1 = vector.load %arg2[%c0_1, %c0_2] : memref<32x128xbf16, #tpu.memory_space<vmem>>, vector<32x128xbf16>
    %cst = arith.constant dense<0.000000e+00> : vector<8x128xf32>
    %2 = tpu.matmul %0, %1, %cst {dimension_numbers = #tpu.dot_dimension_numbers<[1], [0], [0], [1], [0, 0, 1, 1], [], []>} : vector<8x32xbf16>, vector<32x128xbf16>, vector<8x128xf32> -> vector<8x128xf32>
    %c0_3 = arith.constant 0 : index
    %c0_4 = arith.constant 0 : index
    %3 = vector.load %arg3[%c0_3, %c0_4] : memref<1x128xf32, #tpu.memory_space<vmem>>, vector<1x128xf32>
    %4 = vector.broadcast %3 : vector<1x128xf32> to vector<8x128xf32>
    %5 = arith.addf %2, %4 : vector<8x128xf32>
    %6 = tpu.iota {dimensions = array<i32: 1>} : vector<8x128xi32>
    %7 = arith.sitofp %6 : vector<8x128xi32> to vector<8x128xf32>
    %8 = tpu.iota {dimensions = array<i32: 1>} : vector<8x128xi32>
    %9 = arith.sitofp %8 : vector<8x128xi32> to vector<8x128xf32>
    %cst_5 = arith.constant 0.000000e+00 : f32
    %10 = vector.broadcast %cst_5 : f32 to vector<8x128xf32>
    %cst_6 = arith.constant 0.000000e+00 : f32
    %11 = vector.broadcast %cst_6 : f32 to vector<8x128xf32>
    %12 = arith.cmpf oge, %7, %11 : vector<8x128xf32>
    %cst_7 = arith.constant 5.000000e+00 : f32
    %13 = vector.broadcast %cst_7 : f32 to vector<8x128xf32>
    %14 = arith.cmpf olt, %7, %13 : vector<8x128xf32>
    %15 = arith.andi %12, %14 : vector<8x128xi1>
    %cst_8 = arith.constant -1.000000e+30 : f32
    %16 = vector.broadcast %cst_8 : f32 to vector<8x128xf32>
    %17 = arith.select %15, %5, %16 : vector<8x128xi1>, vector<8x128xf32>
    %cst_9 = arith.constant dense<0xFF800000> : vector<8xf32>
    %18 = vector.multi_reduction <maximumf>, %17, %cst_9 [1] : vector<8x128xf32> to vector<8xf32>
    %19 = vector.shape_cast %18 : vector<8xf32> to vector<8x1xf32>
    %20 = vector.broadcast %19 : vector<8x1xf32> to vector<8x128xf32>
    %21 = arith.cmpf oeq, %17, %20 : vector<8x128xf32>
    %cst_10 = arith.constant 1.280000e+02 : f32
    %22 = vector.broadcast %cst_10 : f32 to vector<8x128xf32>
    %23 = arith.select %21, %7, %22 : vector<8x128xi1>, vector<8x128xf32>
    %cst_11 = arith.constant dense<0x7F800000> : vector<8xf32>
    %24 = vector.multi_reduction <minimumf>, %23, %cst_11 [1] : vector<8x128xf32> to vector<8xf32>
    %25 = vector.shape_cast %24 : vector<8xf32> to vector<8x1xf32>
    %cst_12 = arith.constant 0.000000e+00 : f32
    %26 = vector.broadcast %cst_12 : f32 to vector<8x1xf32>
    %27 = arith.subf %25, %26 : vector<8x1xf32>
    %28 = vector.broadcast %27 : vector<8x1xf32> to vector<8x128xf32>
    %29 = arith.cmpf oeq, %9, %28 : vector<8x128xf32>
    %30 = arith.extui %29 : vector<8x128xi1> to vector<8x128xi32>
    %31 = arith.sitofp %30 : vector<8x128xi32> to vector<8x128xf32>
    %32 = arith.addf %10, %31 : vector<8x128xf32>
    %cst_13 = arith.constant 5.000000e+00 : f32
    %33 = vector.broadcast %cst_13 : f32 to vector<8x128xf32>
    %34 = arith.cmpf oge, %7, %33 : vector<8x128xf32>
    %cst_14 = arith.constant 1.000000e+01 : f32
    %35 = vector.broadcast %cst_14 : f32 to vector<8x128xf32>
    %36 = arith.cmpf olt, %7, %35 : vector<8x128xf32>
    %37 = arith.andi %34, %36 : vector<8x128xi1>
    %cst_15 = arith.constant -1.000000e+30 : f32
    %38 = vector.broadcast %cst_15 : f32 to vector<8x128xf32>
    %39 = arith.select %37, %5, %38 : vector<8x128xi1>, vector<8x128xf32>
    %cst_16 = arith.constant dense<0xFF800000> : vector<8xf32>
    %40 = vector.multi_reduction <maximumf>, %39, %cst_16 [1] : vector<8x128xf32> to vector<8xf32>
    %41 = vector.shape_cast %40 : vector<8xf32> to vector<8x1xf32>
    %42 = vector.broadcast %41 : vector<8x1xf32> to vector<8x128xf32>
    %43 = arith.cmpf oeq, %39, %42 : vector<8x128xf32>
    %cst_17 = arith.constant 1.280000e+02 : f32
    %44 = vector.broadcast %cst_17 : f32 to vector<8x128xf32>
    %45 = arith.select %43, %7, %44 : vector<8x128xi1>, vector<8x128xf32>
    %cst_18 = arith.constant dense<0x7F800000> : vector<8xf32>
    %46 = vector.multi_reduction <minimumf>, %45, %cst_18 [1] : vector<8x128xf32> to vector<8xf32>
    %47 = vector.shape_cast %46 : vector<8xf32> to vector<8x1xf32>
    %cst_19 = arith.constant 5.000000e+00 : f32
    %48 = vector.broadcast %cst_19 : f32 to vector<8x1xf32>
    %49 = arith.subf %47, %48 : vector<8x1xf32>
    %50 = vector.broadcast %49 : vector<8x1xf32> to vector<8x128xf32>
    %51 = arith.cmpf oeq, %9, %50 : vector<8x128xf32>
    %52 = arith.extui %51 : vector<8x128xi1> to vector<8x128xi32>
    %53 = arith.sitofp %52 : vector<8x128xi32> to vector<8x128xf32>
    %54 = arith.addf %32, %53 : vector<8x128xf32>
    %cst_20 = arith.constant 1.000000e+01 : f32
    %55 = vector.broadcast %cst_20 : f32 to vector<8x128xf32>
    %56 = arith.cmpf oge, %7, %55 : vector<8x128xf32>
    %cst_21 = arith.constant 1.500000e+01 : f32
    %57 = vector.broadcast %cst_21 : f32 to vector<8x128xf32>
    %58 = arith.cmpf olt, %7, %57 : vector<8x128xf32>
    %59 = arith.andi %56, %58 : vector<8x128xi1>
    %cst_22 = arith.constant -1.000000e+30 : f32
    %60 = vector.broadcast %cst_22 : f32 to vector<8x128xf32>
    %61 = arith.select %59, %5, %60 : vector<8x128xi1>, vector<8x128xf32>
    %cst_23 = arith.constant dense<0xFF800000> : vector<8xf32>
    %62 = vector.multi_reduction <maximumf>, %61, %cst_23 [1] : vector<8x128xf32> to vector<8xf32>
    %63 = vector.shape_cast %62 : vector<8xf32> to vector<8x1xf32>
    %64 = vector.broadcast %63 : vector<8x1xf32> to vector<8x128xf32>
    %65 = arith.cmpf oeq, %61, %64 : vector<8x128xf32>
    %cst_24 = arith.constant 1.280000e+02 : f32
    %66 = vector.broadcast %cst_24 : f32 to vector<8x128xf32>
    %67 = arith.select %65, %7, %66 : vector<8x128xi1>, vector<8x128xf32>
    %cst_25 = arith.constant dense<0x7F800000> : vector<8xf32>
    %68 = vector.multi_reduction <minimumf>, %67, %cst_25 [1] : vector<8x128xf32> to vector<8xf32>
    %69 = vector.shape_cast %68 : vector<8xf32> to vector<8x1xf32>
    %cst_26 = arith.constant 1.000000e+01 : f32
    %70 = vector.broadcast %cst_26 : f32 to vector<8x1xf32>
    %71 = arith.subf %69, %70 : vector<8x1xf32>
    %72 = vector.broadcast %71 : vector<8x1xf32> to vector<8x128xf32>
    %73 = arith.cmpf oeq, %9, %72 : vector<8x128xf32>
    %74 = arith.extui %73 : vector<8x128xi1> to vector<8x128xi32>
    %75 = arith.sitofp %74 : vector<8x128xi32> to vector<8x128xf32>
    %76 = arith.addf %54, %75 : vector<8x128xf32>
    %c8_i32 = arith.constant 8 : i32
    %77 = arith.muli %arg0, %c8_i32 : i32
    %78 = tpu.iota {dimensions = array<i32: 0>} : vector<8x128xi32>
    %79 = vector.broadcast %77 : i32 to vector<8x128xi32>
    %80 = arith.addi %78, %79 : vector<8x128xi32>
    %81 = tpu.iota {dimensions = array<i32: 1>} : vector<8x128xi32>
    %c1640531527_i32 = arith.constant 1640531527 : i32
    %82 = vector.broadcast %c1640531527_i32 : i32 to vector<8x128xi32>
    %83 = arith.muli %80, %82 : vector<8x128xi32>
    %c668265263_i32 = arith.constant 668265263 : i32
    %84 = vector.broadcast %c668265263_i32 : i32 to vector<8x128xi32>
    %85 = arith.muli %81, %84 : vector<8x128xi32>
    %86 = arith.addi %83, %85 : vector<8x128xi32>
    %c506952121_i32 = arith.constant 506952121 : i32
    %87 = vector.broadcast %c506952121_i32 : i32 to vector<8x128xi32>
    %88 = arith.addi %86, %87 : vector<8x128xi32>
    %c2147483647_i32 = arith.constant 2147483647 : i32
    %89 = vector.broadcast %c2147483647_i32 : i32 to vector<8x128xi32>
    %90 = arith.andi %88, %89 : vector<8x128xi32>
    %c15_i32 = arith.constant 15 : i32
    %91 = vector.broadcast %c15_i32 : i32 to vector<8x128xi32>
    %92 = arith.shrsi %90, %91 : vector<8x128xi32>
    %93 = arith.xori %90, %92 : vector<8x128xi32>
    %c73244475_i32 = arith.constant 73244475 : i32
    %94 = vector.broadcast %c73244475_i32 : i32 to vector<8x128xi32>
    %95 = arith.muli %93, %94 : vector<8x128xi32>
    %c2147483647_i32_27 = arith.constant 2147483647 : i32
    %96 = vector.broadcast %c2147483647_i32_27 : i32 to vector<8x128xi32>
    %97 = arith.andi %95, %96 : vector<8x128xi32>
    %c13_i32 = arith.constant 13 : i32
    %98 = vector.broadcast %c13_i32 : i32 to vector<8x128xi32>
    %99 = arith.shrsi %97, %98 : vector<8x128xi32>
    %100 = arith.xori %97, %99 : vector<8x128xi32>
    %c739982445_i32 = arith.constant 739982445 : i32
    %101 = vector.broadcast %c739982445_i32 : i32 to vector<8x128xi32>
    %102 = arith.muli %100, %101 : vector<8x128xi32>
    %c16777215_i32 = arith.constant 16777215 : i32
    %103 = vector.broadcast %c16777215_i32 : i32 to vector<8x128xi32>
    %104 = arith.andi %102, %103 : vector<8x128xi32>
    %105 = arith.sitofp %104 : vector<8x128xi32> to vector<8x128xf32>
    %cst_28 = arith.constant 5.96046448E-8 : f32
    %106 = vector.broadcast %cst_28 : f32 to vector<8x128xf32>
    %107 = arith.mulf %105, %106 : vector<8x128xf32>
    %cst_29 = arith.constant 1.000000e-03 : f32
    %108 = vector.broadcast %cst_29 : f32 to vector<8x128xf32>
    %109 = arith.mulf %107, %108 : vector<8x128xf32>
    %cst_30 = arith.constant 1.000000e+00 : f32
    %110 = vector.broadcast %cst_30 : f32 to vector<8x128xf32>
    %111 = arith.addf %110, %109 : vector<8x128xf32>
    %112 = arith.mulf %76, %111 : vector<8x128xf32>
    %c0_31 = arith.constant 0 : index
    %c0_32 = arith.constant 0 : index
    %113 = vector.load %arg4[%c0_31, %c0_32] : memref<8x128xf32, #tpu.memory_space<vmem>>, vector<8x128xf32>
    tpu.vector_store %arg4[%c0_31, %c0_32], %112 {strides = array<i32>} : memref<8x128xf32, #tpu.memory_space<vmem>>, vector<8x128xf32>,
    return
  }
  func.func @transform_0(%arg0: i32) -> (i32, i32) {
    %c0_i32 = arith.constant 0 : i32
    %c0_i32_0 = arith.constant 0 : i32
    return %arg0, %c0_i32 : i32, i32
  }
  func.func @transform_1(%arg0: i32) -> (i32, i32) {
    %c0_i32 = arith.constant 0 : i32
    %c0_i32_0 = arith.constant 0 : i32
    %c0_i32_1 = arith.constant 0 : i32
    return %c0_i32, %c0_i32_0 : i32, i32
  }
  func.func @transform_2(%arg0: i32) -> (i32, i32) {
    %c0_i32 = arith.constant 0 : i32
    %c0_i32_0 = arith.constant 0 : i32
    %c0_i32_1 = arith.constant 0 : i32
    return %c0_i32, %c0_i32_0 : i32, i32
  }
  func.func @transform_3(%arg0: i32) -> (i32, i32) {
    %c0_i32 = arith.constant 0 : i32
    %c0_i32_0 = arith.constant 0 : i32
    return %arg0, %c0_i32 : i32, i32
  }
}

</mosaic_0001>

<bundles_post_ra>
// kernel: tpu_custom_call.1
= control target key start
LH: loop header
LB: loop body
LE: loop exit
PB: predicated region body
PF: predicated region fallthrough
CT: control target
= control target key end

     0   :  { %8 = vsyncpa [#allocation3], 0  ;;  %s817_s0 = inlined_call_operand.hbm [shape: bf16[16,32], index: 0, kind: input, shape index: {}]   ;;  %s818_s1 = inlined_call_operand.hbm [shape: bf16[32,128], index: 1, kind: input, shape index: {}]   ;;  %s819_s2 = inlined_call_operand.vmem [shape: f32[1,128], index: 2, kind: input, shape index: {}]   ;;  %s820_s3 = inlined_call_operand.hbm [shape: f32[16,128], index: 3, kind: output, shape index: {}]  }
   0x1   :  { %10 = vsyncpa [#allocation3 + $0x1], 0 }
   0x2   :  { %11 = vsyncpa [#allocation6], 0 }
   0x3   :  { %12 = vsyncpa [#allocation4], 0 }
   0x4   :  { %14 = vsyncpa [#allocation4 + $0x1], 0  ;;  %s659_s12 = smov 0   ;;  %s661_s13 = smov 0  }
   0x5   :  { %s663_s14 = smov 0   ;;  %s665_s15 = smov 0  }
   0x6 LB: > { %s130_s18 = sshll.u32 %s818_s1, 4  ;;  %s683_s19 = sadd.s32 4294967295, %s633_s15   ;;  %s633_s15 = sphi %s665_s15, %s830_s15   ;;  %s629_s14 = sphi %s663_s14, %s829_s14   ;;  %s625_s13 = sphi %s661_s13, %s828_s13   ;;  %s621_s12 = sphi %s659_s12, %s827_s12   ;;  %s131_s18 = int_to_ptr.hbm [resolvable:$true] %s130_s18 }
   0x7   : > { %p412_p0 = scmp.ge.s32.totalorder %s633_s15, 1  ;;  %p41_p1 = scmp.eq.s32.totalorder %s683_s19, 0 }
   0x8   : > { %p119_p2 = scmp.lt.s32.totalorder %s633_s15, 3  ;;  %s635_s21 = smov [#allocation5]  }
   0x9   : > { %s132_s22 = sshll.u32 %s635_s21, 4  ;;  %s636_s23 = smov 64   ;;  %s133_s22 = int_to_ptr.vmem [resolvable:$true] %s132_s22 }
   0xa   : > { %p688_p3 = pnand %p412_p0, %p119_p2  ;;  %s637_s24 = smov 4  }
   0xb   : > { %s411_s25 = sadd.s32 4294967294, %s633_s15   ;;  %s699_s26 = sadd.s32 1, %s633_s15  }
   0xc   : > { %p450_p4 = pneg %p688_p3  ;;  %s27_s27 = sadd.s32 1, %s629_s14 }
   0xd   : > { %s24_s28 = ssub.s32 %s633_s15, %s699_s26  ;;  %p34_p7 = scmp.ne.s32.totalorder %s629_s14, %s625_s13 }
   0xe   : > { %p451_p6 = pnand %p450_p4, %p41_p1  ;;  %p25_p8 = scmp.eq.s32.totalorder %s24_s28, 0 }
   0xf   : > { %p35_p9 = scmp.eq.s32.totalorder %s633_s15, 0  ;;  %p40_p10 = scmp.ne.s32.totalorder %s625_s13, %s621_s12 }
  0x10   : > { %453 = dma.hbm_to_vmem [thread:$0]  (!%p451_p6), %s131_s18, 256, %s133_s22, [#allocation6], %s636_s23, %s636_s23, %s637_s24  }
  0x11   : > { %p106_p11 = scmp.eq.s32.totalorder %s683_s19, 1  ;;  %p715_p12 = por %p41_p1, %p40_p10 }
  0x12   : > { %s711_s29 = scalar_select %p25_p8, %s629_s14, %s27_s27  }
  0x13   : > { %p719_p13 = por %p106_p11, %p34_p7  ;;  %p112_p0 = scmp.eq.s32.totalorder %s411_s25, 1 }
  0x14   : > { %p36_p2 = por %p35_p9, %p34_p7  ;;  %s149_s5 = sand.u32 1, %s629_s14  }
  0x15   : > { %p724_p4 = por %p112_p0, %p40_p10  ;;  %p463_p6 = scmp.lt.s32.totalorder %s633_s15, 2 }
  0x16   : > { %s415_s7 = sshll.u32 %s149_s5, 2  ;;  %s416_s8 = sshll.u32 %s633_s15, 2 }
  0x17   : > { %s157_s11 = scalar_lea.hbm %s817_s0, %s416_s8  ;;  %s153_s17 = scalar_lea.vmem [#allocation2], %s415_s7 }
  0x18   : > { %s159_s16 = sshll.u32 %s157_s11, 4  ;;  %s161_s18 = sshll.u32 %s153_s17, 4  ;;  %s160_s16 = int_to_ptr.hbm [resolvable:$true] %s159_s16  ;;  %s162_s18 = int_to_ptr.vmem [resolvable:$true] %s161_s18 }
  0x19   : > { %p733_p8 = pnand %p463_p6, %p36_p2  ;;  %s150_s22 = scalar_lea.sflag [#allocation3], %s149_s5 }
  0x1a   : > { %s533_s23 = sshra.s32 %s160_s16, 4  ;;  %s540_s28 = scalar_lea.hbm %s817_s0, 8  ;;  %s534_s23 = int_to_ptr.hbm [resolvable:$true] %s533_s23 }
  0x1b   : > { %s535_s24 = scalar_lea.hbm %s534_s23, 4  ;;  %p537_p9 = pneg %p733_p8 }
  0x1c   : > { %p536_p7 = scmp.ne.s32.totalorder %s534_s23, %s535_s24  ;;  %p541_p0 = scmp.lt.s32.totalorder %s534_s23, %s817_s0 }
  0x1d   : > { %p542_p2 = scmp.lt.s32.totalorder %s540_s28, %s535_s24 }
  0x1e   : > { %p538_p10 = pnand %p537_p9, %p536_p7 }
  0x1f   : > { %p543_p6 = por %p542_p2, %p541_p0 }
  0x20   : > { %p539_p11 = pneg %p538_p10 }
  0x22   : > { %p544_p5 = pnand %p543_p6, %p539_p11 }
  0x24   : > { %547 = shalt.err (!%p544_p5)
}
  0x25   : > { %457 = dma.hbm_to_vmem [thread:$0]  (!%p733_p8), %s160_s16, 64, %s162_s18, %s150_s22  }
  0x26   : > { %170 = sbr.rel (%p688_p3) target bundleno = 444 (0x1bc), region = 32  ;;  %s750_s5 = sand.u32 (!%p688_p3), 1, %s625_s13  }
  0x27   : > { %s418_s9 = sshll.u32 (!%p688_p3), %s750_s5, 2  ;;  %s173_s10 = scalar_lea.sflag (!%p688_p3), [#allocation3], %s750_s5 }
  0x28   : > { %s176_s11 = scalar_lea.vmem (!%p688_p3), [#allocation2], %s418_s9 }
  0x2b   : > { %608 = dma.done.wait (%p715_p12), %s173_s10, 64  }
  0x2c   : > { %610 = vsyncadd (%p715_p12), %s173_s10, 4294967232 }
  0x2d   : > { %612 = dma.done.wait (%p41_p1), [#allocation6], 256  }
  0x2e   : > { %614 = vsyncadd (%p41_p1), [#allocation6], 4294967040  ;;  %v441_v0 = vld [vmem:[#allocation5 + $0x8] sm:$0xff]  ;;  %v440_v1 = vld [vmem:[#allocation5] sm:$0xff]  ;;  %vm227_vm0 = vcmask 261120   ;;  %v244_v3 = vlaneseq  ;;  %s435_s16 = sshll.u32 %s683_s19, 3 }
  0x2f   : > { %237 = vmatpush.bf16.msra.mxu0 %v441_v0  ;;  %v206_v2 = vld [vmem:[%s176_s11] sm:$0xf]  ;;  %v294_v20 = vstv %s435_s16  ;;  %s420_s17 = sshll.u32 %s750_s5, 3  ;;  %v638_v41 = vmov 0.0   ;;  %s326_s22 = scalar_lea.hbm %s820_s3, %s435_s16 }
  0x30   : > { %v245_v4 = vand.u32 127, %v244_v3  ;;  %v502_v6 = vld [vmem:[%s819_s2] ss:$0 sm:$0xff]  ;;  %v293_v19 = vshrl.u32 %v244_v3, 7  ;;  %s204_s23 = scalar_lea.vmem [#allocation7], %s420_s17  ;;  %s330_s25 = sshll.u32 %s326_s22, 4  ;;  %s331_s25 = int_to_ptr.hbm [resolvable:$true] %s330_s25 }
  0x31   : > { %s328_s24 = sshll.u32 %s204_s23, 4  ;;  %s316_s19 = scalar_lea.sflag [#allocation4], %s750_s5  ;;  %s329_s24 = int_to_ptr.vmem [resolvable:$true] %s328_s24 }
  0x32   : > { %v762_v5 = vcvt.s32.f32 %v245_v4  ;;  %v295_v21 = vadd.s32 %v294_v20, %v293_v19  ;;  %v297_v23 = vmul.u32 668265263, %v245_v4  ;;  %s577_s27 = sshra.s32 %s331_s25, 4  ;;  %s583_s9 = scalar_lea.hbm %s820_s3, 16  ;;  %s578_s27 = int_to_ptr.hbm [resolvable:$true] %s577_s27 }
  0x33   : > { %238 = vmatpush.bf16.msra.mxu0 %v440_v1  ;;  %s579_s28 = scalar_lea.hbm %s578_s27, 8  ;;  %p584_p12 = scmp.lt.s32.totalorder %s578_s27, %s820_s3 }
  0x34   : > { %vm276_vm1 = vcmp.ge.f32.partialorder %v762_v5, 10.0  ;;  %vm277_vm2 = vcmp.lt.f32.partialorder %v762_v5, 15.0  ;;  %vm261_vm3 = vcmp.ge.f32.partialorder %v762_v5, 5.0  ;;  %vm262_vm4 = vcmp.lt.f32.partialorder %v762_v5, 10.0  ;;  %p580_p1 = scmp.ne.s32.totalorder %s578_s27, %s579_s28  ;;  %p585_p8 = scmp.lt.s32.totalorder %s583_s9, %s579_s28 }
  0x35   : > { %vm278_vm5 = vmand %vm276_vm1, %vm277_vm2  ;;  %vm247_vm7 = vcmp.ge.f32.partialorder %v762_v5, 0.0  ;;  %vm248_vm8 = vcmp.lt.f32.partialorder %v762_v5, 5.0  ;;  %v296_v22 = vmul.u32 1640531527, %v295_v21 }
  0x36   : > { %429 = vmatmul.msk.bf16.vlgmr.msra.gmra.mxu0 %vm227_vm0, %v206_v2  ;;  %vm263_vm6 = vmand %vm261_vm3, %vm262_vm4  ;;  %p581_p3 = pnand %p580_p1, %p719_p13  ;;  %p586_p7 = por %p585_p8, %p584_p12 }
  0x37   : > { %vm249_vm9 = vmand %vm247_vm7, %vm248_vm8  ;;  %v298_v24 = vadd.s32 %v297_v23, %v296_v22 }
  0x38   : > { %p582_p5 = pneg %p581_p3 }
  0x39   : > { %v299_v25 = vadd.s32 506952121, %v298_v24 }
  0x3a   : > { %p587_p9 = pnand %p586_p7, %p582_p5 }
  0x3b   : > { %v300_v26 = vand.u32 2147483647, %v299_v25 }
  0x3d   : > { %v301_v27 = vshra.s32 %v300_v26, 15 }
  0x3f   : > { %v302_v28 = vxor.u32 %v301_v27, %v300_v26 }
  0x41   : > { %v303_v29 = vmul.u32 73244475, %v302_v28 }
  0x43   : > { %v304_v30 = vand.u32 2147483647, %v303_v29 }
  0x45   : > { %v305_v31 = vshra.s32 %v304_v30, 13 }
  0x47   : > { %v306_v32 = vxor.u32 %v305_v31, %v304_v30 }
  0x49   : > { %v307_v33 = vmul.u32 739982445, %v306_v32 }
  0x4b   : > { %v308_v34 = vand.u32 16777215, %v307_v33 }
  0x4d   : > { %v309_v35 = vcvt.s32.f32 %v308_v34 }
  0x4f   : > { %v310_v39 = vmul.f32 5.9604645e-08, %v309_v35 }
  0x51   : > { %v311_v40 = vmul.f32 0.001, %v310_v39 }
  0x53   : > { %v312_v47 = vadd.f32 1.0, %v311_v40 }
  0xb3   : > { %v240_v7 = vpop.f32.mrf.mxu0 }
  0xb4   : > { %v241_v8 = vadd.f32 %v502_v6, %v240_v7 }
  0xb6   : > { %v279_v9 = vsel %vm278_vm5, %v241_v8, -1e+30  ;;  %v264_v10 = vsel %vm263_vm6, %v241_v8, -1e+30  ;;  %v250_v12 = vsel %vm249_vm9, %v241_v8, -1e+30 }
  0xb7   : > { %280 = vmax.xlane.f32.xlu1 %v279_v9  ;;  %265 = vmax.xlane.f32.xlu0 %v264_v10 }
  0xbb   : > { %v242_v11 = vpop.f32.mrf.mxu0 }
  0xbf   : > { %251 = vmax.xlane.f32.xlu0 %v250_v12 }
 0x12a   : > { %v266_v13 = vpop.xlane.xlu0 %265  ;;  %v281_v17 = vpop.xlane.xlu1 %280 }
 0x12b   : > { %vm267_vm10 = vcmp.eq.f32.partialorder %v264_v10, %v266_v13  ;;  %vm282_vm12 = vcmp.eq.f32.partialorder %v279_v9, %v281_v17 }
 0x12c   : > { %v268_v14 = vsel %vm267_vm10, %v762_v5, 128.0  ;;  %v283_v18 = vsel %vm282_vm12, %v762_v5, 128.0 }
 0x12d   : > { %269 = vmin.xlane.f32.xlu1 %v268_v14 }
 0x132   : > { %v252_v15 = vpop.xlane.xlu0 %251 }
 0x133   : > { %vm253_vm11 = vcmp.eq.f32.partialorder %v250_v12, %v252_v15 }
 0x134   : > { %v254_v16 = vsel %vm253_vm11, %v762_v5, 128.0 }
 0x135   : > { %255 = vmin.xlane.f32.xlu2 %v254_v16 }
 0x13d   : > { %284 = vmin.xlane.f32.xlu2 %v283_v18 }
 0x1a0   : > { %v270_v36 = vpop.xlane.xlu1 %269 }
 0x1a1   : > { %v431_v38 = vadd.f32 -5.0, %v270_v36 }
 0x1a3   : > { %vm272_vm14 = vcmp.eq.f32.partialorder %v762_v5, %v431_v38 }
 0x1a4   : > { %v432_v45 = vsel %vm272_vm14, 1.0, %v638_v41 }
 0x1a8   : > { %v256_v37 = vpop.xlane.xlu2 %255 }
 0x1a9   : > { %vm257_vm13 = vcmp.eq.f32.partialorder %v762_v5, %v256_v37 }
 0x1aa   : > { %v430_v42 = vsel %vm257_vm13, 1.0, %v638_v41 }
 0x1ab   : > { %v275_v46 = vadd.f32 %v432_v45, %v430_v42 }
 0x1b0   : > { %v285_v43 = vpop.xlane.xlu2 %284 }
 0x1b1   : > { %v433_v44 = vadd.f32 -10.0, %v285_v43 }
 0x1b3   : > { %vm287_vm15 = vcmp.eq.f32.partialorder %v762_v5, %v433_v44 }
 0x1b4   : > { %v434_v48 = vsel %vm287_vm15, 1.0, %v638_v41 }
 0x1b5   : > { %v290_v49 = vadd.f32 %v434_v48, %v275_v46 }
 0x1b7   : > { %v313_v50 = vmul.f32 %v312_v47, %v290_v49 }
 0x1b9   : > { %314 = vst [vmem:[%s204_s23] sm:$0xff] %v313_v50 }
 0x1ba   : > { %590 = shalt.err (!%p587_p9)
}
 0x1bb   : > { %448 = dma.vmem_to_hbm [thread:$0]  (%p719_p13), %s329_s24, 128, %s331_s25, %s316_s19  }
 0x1bc PF: > { %s342_s5 = sand.u32 1, %s621_s12   ;;  %p826_p10 = scmp.ge.s32.totalorder %s633_s15, 2 }
 0x1bd   : > { %s343_s20 = scalar_lea.sflag [#allocation4], %s342_s5 }
 0x1be   : > { %p459_p11 = pnand %p826_p10, %p724_p4 }
 0x1c0   : > { %p460_p0 = pneg %p459_p11 }
 0x1c2   : > { %616 = dma.done.wait (%p460_p0), %s343_s20, 128  }
 0x1c3   : > { %618 = vsyncadd (%p460_p0), %s343_s20, 4294967168  ;;  %p17_p2 = scmp.ge.s32.totalorder %s699_s26, 4   ;;  %s827_s12 = smov %s625_s13 }
 0x1c4   : > { %s828_s13 = smov %s629_s14  ;;  %s829_s14 = smov %s711_s29 }
 0x1c5   : > { %s830_s15 = smov %s699_s26  ;;  %19 = sbr.rel (!%p17_p2) target bundleno = 6 (0x6), region = 81 }
 0x1ca   :  { %349 = vsyncpa [#allocation3], 1 }
 0x1cb   :  { %351 = vsyncpa [#allocation3 + $0x1], 1 }
 0x1cc   :  { %352 = vsyncpa [#allocation6], 1 }
 0x1cd   :  { %353 = vsyncpa [#allocation4], 1 }
 0x1ce   :  { %355 = vsyncpa [#allocation4 + $0x1], 1 }

</bundles_post_ra>
